<compile_context>
chip_gen: v5e
topology: v5e:2x2
jax: 0.10.0
libtpu: 0.0.40
codegen_flags: <defaults>
</compile_context>

<pallas_src>
import functools

import jax
import jax.numpy as jnp
from jax.experimental import pallas as pl
from jax.experimental.pallas import tpu as pltpu


def _round_up(n: int, m: int) -> int:
    return ((n + m - 1) // m) * m


def _make_value_mlp_kernel(num_hidden_layers: int):
    """Fused MLP kernel for the value network.

    Ref order: (x, w0, b0, ..., w_{H-1}, b_{H-1}, w_head, b_head, out)
      w_i    : (in_i, out_i) hidden-layer weight (y = x @ w_i + b_i)
      b_i    : (1, out_i)
      w_head : (1, last_hidden)  -- value-head weight stored as a row
      b_head : (1, 1)
      out    : (TILE_B, 1)
    """

    def kernel(*refs):
        x_ref = refs[0]
        out_ref = refs[-1]
        wb = refs[1:-1]

        h = x_ref[...]
        for i in range(num_hidden_layers):
            w = wb[2 * i][...]
            b = wb[2 * i + 1][...].astype(jnp.float32)
            # MXU matmul in the params' native dtype (bf16-native when bf16
            # params are passed); accumulate in f32.
            y = jnp.dot(h.astype(w.dtype), w,
                        preferred_element_type=jnp.float32) + b
            h = jnp.tanh(y)  # f32 epilogue: VPU add + EUP tanh

        # Value head: broadcast multiply (VPU) + lane reduce (XLU) instead of a
        # lane-sparse N=1 MXU matmul.
        w_head = wb[-2][...].astype(jnp.float32)   # (1, last_hidden)
        b_head = wb[-1][...].astype(jnp.float32)   # (1, 1)
        v = jnp.sum(h.astype(jnp.float32) * w_head, axis=-1, keepdims=True) + b_head
        out_ref[...] = v.astype(out_ref.dtype)

    return kernel


def value_network_forward(x, params, *, tile_b: int = 1024):
    """Fused ValueNetwork forward pass.

    Args:
      x: [..., input_dim] activations (f32 or bf16); leading dims are flattened.
      params: list of (W, b); W is [in, out], last layer has out_features == 1.
      tile_b: requested batch tile (rows per grid step); auto-capped by VMEM.

    Returns:
      [...] float32 value estimates (matches PyTorch `.squeeze(-1)`).
    """
    assert len(params) >= 1 and params[-1][0].shape[-1] == 1
    lead_shape = x.shape[:-1]
    input_dim = x.shape[-1]
    x = x.reshape(-1, input_dim)
    B = x.shape[0]
    num_hidden = len(params) - 1

    # ---- batch tiling -------------------------------------------------------
    # Cap the tile so the widest streamed / activation slab (lane-padded to 128,
    # f32) stays ~<=4 MiB -> <=~12 MiB with double-buffering + temporaries,
    # comfortably inside the scoped-VMEM default on v5e/v6e/v7x.
    widest = max([input_dim] + [w.shape[1] for (w, _) in params[:-1]])
    bytes_per_row = _round_up(widest, 128) * 4
    max_tile = max(8, (4 * 1024 * 1024) // bytes_per_row)
    tile_b = min(tile_b, max_tile)
    # Clamp for tiny batches and round to the sublane granule.
    tile_b = _round_up(max(8, min(tile_b, _round_up(B, 8))), 8)
    padded_b = _round_up(B, tile_b)
    if padded_b != B:
        x = jnp.pad(x, ((0, padded_b - B), (0, 0)))
    grid = (padded_b // tile_b,)

    # ---- flatten params: biases as (1, out) rows, head weight as a (1, H) row ----
    resident = lambda i: (0, 0)  # constant index_map -> DMA'd once, pinned in VMEM
    flat_args = [x]
    in_specs = [pl.BlockSpec((tile_b, input_dim), lambda i: (i, 0))]
    for (w, b) in params[:-1]:
        b2 = b.reshape(1, -1)
        flat_args += [w, b2]
        in_specs += [pl.BlockSpec(w.shape, resident),
                     pl.BlockSpec(b2.shape, resident)]
    w_head = params[-1][0].reshape(1, -1)   # (H, 1) -> (1, H), same element order
    b_head = params[-1][1].reshape(1, 1)
    flat_args += [w_head, b_head]
    in_specs += [pl.BlockSpec(w_head.shape, resident),
                 pl.BlockSpec(b_head.shape, resident)]

    # ---- advisory cost estimate (kernel is HBM-read bound on x) ----
    dims = [input_dim] + [w.shape[1] for (w, _) in params]
    flops = 2 * padded_b * sum(dims[i] * dims[i + 1] for i in range(len(dims) - 1))
    transcendentals = padded_b * sum(dims[1:-1])
    bytes_accessed = (x.size * x.dtype.itemsize
                      + sum(w.size * w.dtype.itemsize + b.size * b.dtype.itemsize
                            for (w, b) in params)
                      + padded_b * 4)

    out = pl.pallas_call(
        _make_value_mlp_kernel(num_hidden),
        out_shape=jax.ShapeDtypeStruct((padded_b, 1), jnp.float32),
        grid=grid,
        in_specs=in_specs,
        out_specs=pl.BlockSpec((tile_b, 1), lambda i: (i, 0)),
        compiler_params=pltpu.CompilerParams(
            dimension_semantics=("parallel",)),
        cost_estimate=pl.CostEstimate(
            flops=flops,
            transcendentals=transcendentals,
            bytes_accessed=bytes_accessed),
    )(*flat_args)

    return out[:B, 0].reshape(lead_shape)  # squeeze(-1), drop batch padding


def init_value_network_params(key, input_dim, hidden_dims, dtype=jnp.float32):
    """Deterministic synthetic init matching the PyTorch module's layer shapes."""
    dims = [input_dim] + list(hidden_dims) + [1]
    params = []
    for i in range(len(dims) - 1):
        key, kw, kb = jax.random.split(key, 3)
        bound = 1.0 / float(dims[i]) ** 0.5
        w = jax.random.uniform(kw, (dims[i], dims[i + 1]), jnp.float32, -bound, bound)
        b = jax.random.uniform(kb, (dims[i + 1],), jnp.float32, -bound, bound)
        params.append((w.astype(dtype), b))
    return params


def _reference_forward(x, params):
    """Pure-JAX reference: (Linear -> Tanh)* -> Linear(out=1) -> squeeze(-1)."""
    h = x.astype(jnp.float32)
    for (w, b) in params[:-1]:
        h = jnp.tanh(h @ w.astype(jnp.float32) + b.astype(jnp.float32))
    w_head, b_head = params[-1]
    w_row = w_head.astype(jnp.float32)[:, 0]
    return jnp.sum(h * w_row, axis=-1) + b_head.astype(jnp.float32)[0]


if __name__ == "__main__":
    key = jax.random.PRNGKey(0)

    batch = 200            # deliberately not a multiple of tile_b -> exercises padding
    input_dim = 16
    hidden_dims = (32, 32)
    tile_b = 64            # small tile for the demo; use 512-2048 in production

    key, kx = jax.random.split(key)
    x = jax.random.normal(kx, (batch, input_dim), dtype=jnp.float32)
    params = init_value_network_params(key, input_dim, hidden_dims)

    # ---- f32 path ----
    fwd = jax.jit(functools.partial(value_network_forward, params=params, tile_b=tile_b))
    out = jax.block_until_ready(fwd(x))
    ref = _reference_forward(x, params)
    assert out.shape == (batch,), out.shape
    assert jnp.allclose(out, ref, atol=1e-4, rtol=1e-4), \
        float(jnp.max(jnp.abs(out - ref)))

    # ---- N-D leading-batch path (e.g. [T, B, obs] PPO rollouts) ----
    key, kx3 = jax.random.split(key)
    x3 = jax.random.normal(kx3, (3, 5, input_dim), dtype=jnp.float32)
    out3 = jax.block_until_ready(
        jax.jit(functools.partial(value_network_forward, params=params, tile_b=tile_b))(x3))
    ref3 = _reference_forward(x3.reshape(-1, input_dim), params).reshape(3, 5)
    assert out3.shape == (3, 5), out3.shape
    assert jnp.allclose(out3, ref3, atol=1e-4, rtol=1e-4), \
        float(jnp.max(jnp.abs(out3 - ref3)))

    # ---- bf16 params/activations path (bf16-native MXU, f32 accum + epilogue) ----
    params_bf16 = [(w.astype(jnp.bfloat16), b) for (w, b) in params]
    x_bf16 = x.astype(jnp.bfloat16)
    fwd16 = jax.jit(functools.partial(value_network_forward,
                                      params=params_bf16, tile_b=tile_b))
    out16 = jax.block_until_ready(fwd16(x_bf16))
    ref16 = _reference_forward(x_bf16.astype(jnp.float32),
                               [(w.astype(jnp.float32), b) for (w, b) in params_bf16])
    assert out16.shape == (batch,)
    assert jnp.allclose(out16, ref16, atol=3e-2, rtol=3e-2), \
        float(jnp.max(jnp.abs(out16 - ref16)))

    print("KERNEL_OK")
</pallas_src>

<mosaic_0001>
module attributes {stable_mosaic.version = 11 : i64} {
  func.func @kernel(%arg0: i32, %arg1: memref<64x16xf32, #tpu.memory_space<vmem>>, %arg2: memref<16x32xf32, #tpu.memory_space<vmem>>, %arg3: memref<1x32xf32, #tpu.memory_space<vmem>>, %arg4: memref<32x32xf32, #tpu.memory_space<vmem>>, %arg5: memref<1x32xf32, #tpu.memory_space<vmem>>, %arg6: memref<1x32xf32, #tpu.memory_space<vmem>>, %arg7: memref<1x1xf32, #tpu.memory_space<vmem>>, %arg8: memref<64x1xf32, #tpu.memory_space<vmem>>) attributes {dimension_semantics = [#tpu.dimension_semantics<parallel>], iteration_bounds = array<i64: 4>, scalar_prefetch = 0 : i64, scratch_operands = 0 : i64, tpu.core_type = #tpu.core_type<tc>, window_params = [{transform_indices = @transform_0, window_bounds = array<i64: 64, 16>}, {pipeline_mode = #tpu.pipeline_mode<synchronous>, transform_indices = @transform_1, window_bounds = array<i64: 16, 32>}, {pipeline_mode = #tpu.pipeline_mode<synchronous>, transform_indices = @transform_2, window_bounds = array<i64: 1, 32>}, {pipeline_mode = #tpu.pipeline_mode<synchronous>, transform_indices = @transform_3, window_bounds = array<i64: 32, 32>}, {pipeline_mode = #tpu.pipeline_mode<synchronous>, transform_indices = @transform_4, window_bounds = array<i64: 1, 32>}, {pipeline_mode = #tpu.pipeline_mode<synchronous>, transform_indices = @transform_5, window_bounds = array<i64: 1, 32>}, {pipeline_mode = #tpu.pipeline_mode<synchronous>, transform_indices = @transform_6, window_bounds = array<i64: 1, 1>}, {transform_indices = @transform_7, window_bounds = array<i64: 64, 1>}]} {
    %c0 = arith.constant 0 : index
    %c0_0 = arith.constant 0 : index
    %0 = vector.load %arg1[%c0, %c0_0] : memref<64x16xf32, #tpu.memory_space<vmem>>, vector<64x16xf32>
    %c0_1 = arith.constant 0 : index
    %c0_2 = arith.constant 0 : index
    %1 = vector.load %arg2[%c0_1, %c0_2] : memref<16x32xf32, #tpu.memory_space<vmem>>, vector<16x32xf32>
    %c0_3 = arith.constant 0 : index
    %c0_4 = arith.constant 0 : index
    %2 = vector.load %arg3[%c0_3, %c0_4] : memref<1x32xf32, #tpu.memory_space<vmem>>, vector<1x32xf32>
    %cst = arith.constant dense<0.000000e+00> : vector<64x32xf32>
    %3 = tpu.matmul %0, %1, %cst {dimension_numbers = #tpu.dot_dimension_numbers<[1], [0], [0], [1], [0, 0, 1, 1], [], []>} : vector<64x16xf32>, vector<16x32xf32>, vector<64x32xf32> -> vector<64x32xf32>
    %4 = vector.broadcast %2 : vector<1x32xf32> to vector<64x32xf32>
    %5 = arith.addf %3, %4 : vector<64x32xf32>
    %6 = math.tanh %5 : vector<64x32xf32>
    %c0_5 = arith.constant 0 : index
    %c0_6 = arith.constant 0 : index
    %7 = vector.load %arg4[%c0_5, %c0_6] : memref<32x32xf32, #tpu.memory_space<vmem>>, vector<32x32xf32>
    %c0_7 = arith.constant 0 : index
    %c0_8 = arith.constant 0 : index
    %8 = vector.load %arg5[%c0_7, %c0_8] : memref<1x32xf32, #tpu.memory_space<vmem>>, vector<1x32xf32>
    %cst_9 = arith.constant dense<0.000000e+00> : vector<64x32xf32>
    %9 = tpu.matmul %6, %7, %cst_9 {dimension_numbers = #tpu.dot_dimension_numbers<[1], [0], [0], [1], [0, 0, 1, 1], [], []>} : vector<64x32xf32>, vector<32x32xf32>, vector<64x32xf32> -> vector<64x32xf32>
    %10 = vector.broadcast %8 : vector<1x32xf32> to vector<64x32xf32>
    %11 = arith.addf %9, %10 : vector<64x32xf32>
    %12 = math.tanh %11 : vector<64x32xf32>
    %c0_10 = arith.constant 0 : index
    %c0_11 = arith.constant 0 : index
    %13 = vector.load %arg6[%c0_10, %c0_11] : memref<1x32xf32, #tpu.memory_space<vmem>>, vector<1x32xf32>
    %c0_12 = arith.constant 0 : index
    %c0_13 = arith.constant 0 : index
    %14 = vector.load %arg7[%c0_12, %c0_13] : memref<1x1xf32, #tpu.memory_space<vmem>>, vector<1x1xf32>
    %15 = vector.broadcast %13 : vector<1x32xf32> to vector<64x32xf32>
    %16 = arith.mulf %12, %15 : vector<64x32xf32>
    %cst_14 = arith.constant dense<0.000000e+00> : vector<64xf32>
    %17 = vector.multi_reduction <add>, %16, %cst_14 [1] : vector<64x32xf32> to vector<64xf32>
    %18 = vector.shape_cast %17 : vector<64xf32> to vector<64x1xf32>
    %19 = vector.broadcast %14 : vector<1x1xf32> to vector<64x1xf32>
    %20 = arith.addf %18, %19 : vector<64x1xf32>
    %c0_15 = arith.constant 0 : index
    %c0_16 = arith.constant 0 : index
    %21 = vector.load %arg8[%c0_15, %c0_16] : memref<64x1xf32, #tpu.memory_space<vmem>>, vector<64x1xf32>
    tpu.vector_store %arg8[%c0_15, %c0_16], %20 {strides = array<i32>} : memref<64x1xf32, #tpu.memory_space<vmem>>, vector<64x1xf32>,
    return
  }
  func.func @transform_0(%arg0: i32) -> (i32, i32) {
    %c0_i32 = arith.constant 0 : i32
    %c0_i32_0 = arith.constant 0 : i32
    return %arg0, %c0_i32 : i32, i32
  }
  func.func @transform_1(%arg0: i32) -> (i32, i32) {
    %c0_i32 = arith.constant 0 : i32
    %c0_i32_0 = arith.constant 0 : i32
    %c0_i32_1 = arith.constant 0 : i32
    return %c0_i32, %c0_i32_0 : i32, i32
  }
  func.func @transform_2(%arg0: i32) -> (i32, i32) {
    %c0_i32 = arith.constant 0 : i32
    %c0_i32_0 = arith.constant 0 : i32
    %c0_i32_1 = arith.constant 0 : i32
    return %c0_i32, %c0_i32_0 : i32, i32
  }
  func.func @transform_3(%arg0: i32) -> (i32, i32) {
    %c0_i32 = arith.constant 0 : i32
    %c0_i32_0 = arith.constant 0 : i32
    %c0_i32_1 = arith.constant 0 : i32
    return %c0_i32, %c0_i32_0 : i32, i32
  }
  func.func @transform_4(%arg0: i32) -> (i32, i32) {
    %c0_i32 = arith.constant 0 : i32
    %c0_i32_0 = arith.constant 0 : i32
    %c0_i32_1 = arith.constant 0 : i32
    return %c0_i32, %c0_i32_0 : i32, i32
  }
  func.func @transform_5(%arg0: i32) -> (i32, i32) {
    %c0_i32 = arith.constant 0 : i32
    %c0_i32_0 = arith.constant 0 : i32
    %c0_i32_1 = arith.constant 0 : i32
    return %c0_i32, %c0_i32_0 : i32, i32
  }
  func.func @transform_6(%arg0: i32) -> (i32, i32) {
    %c0_i32 = arith.constant 0 : i32
    %c0_i32_0 = arith.constant 0 : i32
    %c0_i32_1 = arith.constant 0 : i32
    return %c0_i32, %c0_i32_0 : i32, i32
  }
  func.func @transform_7(%arg0: i32) -> (i32, i32) {
    %c0_i32 = arith.constant 0 : i32
    %c0_i32_0 = arith.constant 0 : i32
    return %arg0, %c0_i32 : i32, i32
  }
}

</mosaic_0001>

<bundles_post_ra>
// kernel: value_network_forward.1
= control target key start
LH: loop header
LB: loop body
LE: loop exit
PB: predicated region body
PF: predicated region fallthrough
CT: control target
= control target key end

     0   :  { %s695_s26 = smov 0   ;;  %s778_s0 = inlined_call_operand.vmem [shape: f32[256,16], index: 0, kind: input, shape index: {}]   ;;  %s779_s1 = inlined_call_operand.vmem [shape: f32[16,32], index: 1, kind: input, shape index: {}]   ;;  %s780_s2 = inlined_call_operand.vmem [shape: f32[1,32], index: 2, kind: input, shape index: {}]   ;;  %s781_s3 = inlined_call_operand.vmem [shape: f32[32,32], index: 3, kind: input, shape index: {}]   ;;  %s782_s4 = inlined_call_operand.vmem [shape: f32[1,32], index: 4, kind: input, shape index: {}]   ;;  %s783_s5 = inlined_call_operand.vmem [shape: f32[1,32], index: 5, kind: input, shape index: {}]   ;;  %s784_s6 = inlined_call_operand.<no memory space> [shape: f32[1,1], index: 6, kind: input, shape index: {}]   ;;  %s785_s7 = inlined_call_operand.vmem [shape: f32[256,1], index: 7, kind: output, shape index: {}]  }
   0x1   :  { %v12_v0 = vstv %s784_s6 }
   0x2   :  { %13 = vst [vmem:[#allocation2] sm:$0x1] %v12_v0 }
   0x3 LB: > { %s567_s27 = sadd.s32 4294967295, %s650_s26   ;;  %p571_p0 = scmp.ge.s32.totalorder %s650_s26, 1  ;;  %s650_s26 = sphi %s695_s26, %s19_s26  }
   0x4   : > { %p240_p1 = scmp.lt.s32.totalorder %s650_s26, 5 }
   0x6   : > { %p241_p2 = pnand %p571_p0, %p240_p1 }
   0x7   : > { %s572_s8 = sshll.u32 (!%p241_p2), %s567_s27, 3 }
   0x8   : > { %244 = sbr.rel (%p241_p2) target bundleno = 471 (0x1d7), region = 48  ;;  %p273_p3 = scmp.lt.s32.totalorder (!%p241_p2), %s572_s8, 31 }
   0xd   : > { %v293_v1 = vld [vmem:[%s779_s1 + $0x8] sm:$0xff]  ;;  %v292_v2 = vld [vmem:[%s779_s1] sm:$0xff]  ;;  %s787_s8 = smov (!%p273_p3, %s572_s8), 31  ;;  %vm298_vm0 = vcmask 130048   ;;  %v375_v11 = vld [vmem:[%s781_s3 + $0x18] sm:$0xff]  ;;  %vm380_vm1 = vcmask 261120  }
   0xe   : > { %337 = vmatpush.msra.mxu0 %v293_v1  ;;  %594 = vmatpush.msra.mxu3 %v293_v1  ;;  %s573_s9 = sshll.u32 %s787_s8, 3  ;;  %v374_v12 = vld [vmem:[%s781_s3 + $0x10] sm:$0xff]  ;;  %v373_v13 = vld [vmem:[%s781_s3 + $0x8] sm:$0xff]  ;;  %v372_v14 = vld [vmem:[%s781_s3] sm:$0xff]  ;;  %vm502_vm2 = vcmask 7168  }
   0xf   : > { %s276_s12 = scalar_lea.vmem %s778_s0, %s573_s9  ;;  %417 = vmatpush.msra.mxu1 %v375_v11  ;;  %596 = vmatpush.msra.mxu2 %v375_v11  ;;  %v608_v15 = vld [vmem:[%s780_s2] ss:$0 sm:$0xff]  ;;  %s282_s6 = scalar_lea.vmem %s785_s7, %s573_s9 }
  0x10   : > { %338 = vmatpush.msra.mxu0 %v292_v2  ;;  %595 = vmatpush.msra.mxu3 %v292_v2  ;;  %v284_v3 = vld [vmem:[%s276_s12] sm:$0xff]  ;;  %v289_v4 = vld [vmem:[%s276_s12 + $0x28] sm:$0xff]  ;;  %v290_v6 = vld [vmem:[%s276_s12 + $0x30] sm:$0xff] }
  0x11   : > { %576 = vmatmul.msk.f32.vlgmr.msra.gmra.mxu0 %vm298_vm0, %v284_v3  ;;  %581 = vmatmul.msk.f32.vlgmr.msra.gmra.mxu3 %vm298_vm0, %v289_v4  ;;  %v285_v5 = vld [vmem:[%s276_s12 + $0x8] sm:$0xff]  ;;  %v286_v7 = vld [vmem:[%s276_s12 + $0x10] sm:$0xff]  ;;  %v291_v8 = vld [vmem:[%s276_s12 + $0x38] sm:$0xff] }
  0x12   : > { %v287_v9 = vld [vmem:[%s276_s12 + $0x18] sm:$0xff]  ;;  %v288_v10 = vld [vmem:[%s276_s12 + $0x20] sm:$0xff]  ;;  %418 = vmatpush.msra.mxu1 %v374_v12  ;;  %597 = vmatpush.msra.mxu2 %v374_v12 }
  0x13   : > { %v609_v40 = vld [vmem:[%s782_s4] ss:$0 sm:$0xff] }
  0x14   : > { %419 = vmatpush.msra.mxu1 %v373_v13  ;;  %598 = vmatpush.msra.mxu2 %v373_v13  ;;  %v610_v43 = vld [vmem:[%s783_s5] ss:$0 sm:$0xff] }
  0x16   : > { %420 = vmatpush.msra.mxu1 %v372_v14  ;;  %599 = vmatpush.msra.mxu2 %v372_v14 }
  0x19   : > { %577 = vmatmul.msk.f32.gmra.mxu0 %vm298_vm0, %v285_v5  ;;  %582 = vmatmul.msk.f32.gmra.mxu3 %vm298_vm0, %v290_v6 }
  0x21   : > { %578 = vmatmul.msk.f32.gmra.mxu0 %vm298_vm0, %v286_v7  ;;  %583 = vmatmul.msk.f32.gmra.mxu3 %vm298_vm0, %v291_v8 }
  0x29   : > { %579 = vmatmul.msk.f32.gmra.mxu0 %vm298_vm0, %v287_v9 }
  0x31   : > { %580 = vmatmul.msk.f32.gmra.mxu0 %vm298_vm0, %v288_v10 }
  0x8e   : > { %v340_v16 = vpop.f32.mrf.mxu0 }
  0x8f   : > { %v341_v17 = vadd.f32 %v608_v15, %v340_v16 }
  0x91   : > { %612 = vtanh.f32 %v341_v17 }
  0x94   : > { %v355_v27 = vpop.f32.mrf.mxu3 }
  0x95   : > { %v356_v31 = vadd.f32 %v608_v15, %v355_v27 }
  0x96   : > { %v343_v18 = vpop.f32.mrf.mxu0 }
  0x97   : > { %v613_v19 = vpop.eup %612  ;;  %v344_v20 = vadd.f32 %v608_v15, %v343_v18  ;;  %v611_v18 = vld [vmem:[#allocation2] ss:$0 sm:$0xff] }
  0x98   : > { %584 = vmatmul.msk.f32.vlgmr.msra.gmra.mxu1 %vm380_vm1, %v613_v19 }
  0x99   : > { %614 = vtanh.f32 %v344_v20 }
  0x9c   : > { %v358_v32 = vpop.f32.mrf.mxu3 }
  0x9d   : > { %v359_v34 = vadd.f32 %v608_v15, %v358_v32 }
  0x9e   : > { %v346_v21 = vpop.f32.mrf.mxu0 }
  0x9f   : > { %v615_v22 = vpop.eup %614  ;;  %v347_v23 = vadd.f32 %v608_v15, %v346_v21 }
  0xa0   : > { %585 = vmatmul.msk.f32.gmra.mxu1 %vm380_vm1, %v615_v22 }
  0xa1   : > { %616 = vtanh.f32 %v347_v23 }
  0xa4   : > { %v361_v36 = vpop.f32.mrf.mxu3 }
  0xa5   : > { %v362_v37 = vadd.f32 %v608_v15, %v361_v36 }
  0xa6   : > { %v349_v24 = vpop.f32.mrf.mxu0 }
  0xa7   : > { %v617_v25 = vpop.eup %616  ;;  %v350_v26 = vadd.f32 %v608_v15, %v349_v24 }
  0xa8   : > { %586 = vmatmul.msk.f32.gmra.mxu1 %vm380_vm1, %v617_v25 }
  0xa9   : > { %618 = vtanh.f32 %v350_v26 }
  0xae   : > { %v352_v28 = vpop.f32.mrf.mxu0 }
  0xaf   : > { %v619_v29 = vpop.eup %618  ;;  %v353_v30 = vadd.f32 %v608_v15, %v352_v28 }
  0xb0   : > { %587 = vmatmul.msk.f32.gmra.mxu1 %vm380_vm1, %v619_v29 }
  0xb1   : > { %620 = vtanh.f32 %v353_v30 }
  0xb2   : > { %622 = vtanh.f32 %v356_v31 }
  0xb3   : > { %624 = vtanh.f32 %v359_v34 }
  0xb4   : > { %626 = vtanh.f32 %v362_v37 }
  0xb7   : > { %v621_v33 = vpop.eup %620 }
  0xb8   : > { %588 = vmatmul.msk.f32.vlgmr.msra.gmra.mxu2 %vm380_vm1, %v621_v33  ;;  %v623_v35 = vpop.eup %622 }
  0xb9   : > { %v625_v38 = vpop.eup %624 }
  0xba   : > { %v627_v39 = vpop.eup %626 }
  0xc0   : > { %589 = vmatmul.msk.f32.gmra.mxu2 %vm380_vm1, %v623_v35 }
  0xc8   : > { %590 = vmatmul.msk.f32.gmra.mxu2 %vm380_vm1, %v625_v38 }
  0xd0   : > { %591 = vmatmul.msk.f32.gmra.mxu2 %vm380_vm1, %v627_v39 }
 0x115   : > { %v422_v41 = vpop.f32.mrf.mxu1 }
 0x116   : > { %v423_v42 = vadd.f32 %v609_v40, %v422_v41 }
 0x118   : > { %628 = vtanh.f32 %v423_v42 }
 0x11d   : > { %v425_v44 = vpop.f32.mrf.mxu1 }
 0x11e   : > { %v629_v45 = vpop.eup %628  ;;  %v426_v46 = vadd.f32 %v609_v40, %v425_v44 }
 0x11f   : > { %v459_v47 = vmul.f32 %v629_v45, %v610_v43 }
 0x120   : > { %630 = vtanh.f32 %v426_v46 }
 0x121   : > { %v467_v48 = vsel %vm380_vm1, %v459_v47, 0.0 }
 0x122   : > { %468 = vadd.xlane.f32.xlu0 %v467_v48 }
 0x125   : > { %v428_v49 = vpop.f32.mrf.mxu1 }
 0x126   : > { %v631_v50 = vpop.eup %630  ;;  %v429_v51 = vadd.f32 %v609_v40, %v428_v49 }
 0x127   : > { %v460_v52 = vmul.f32 %v631_v50, %v610_v43 }
 0x128   : > { %632 = vtanh.f32 %v429_v51 }
 0x129   : > { %v470_v53 = vsel %vm380_vm1, %v460_v52, 0.0 }
 0x12a   : > { %471 = vadd.xlane.f32.xlu0 %v470_v53 }
 0x12d   : > { %v431_v54 = vpop.f32.mrf.mxu1 }
 0x12e   : > { %v633_v55 = vpop.eup %632  ;;  %v432_v56 = vadd.f32 %v609_v40, %v431_v54 }
 0x12f   : > { %v461_v57 = vmul.f32 %v633_v55, %v610_v43 }
 0x130   : > { %634 = vtanh.f32 %v432_v56 }
 0x131   : > { %v473_v58 = vsel %vm380_vm1, %v461_v57, 0.0 }
 0x132   : > { %474 = vadd.xlane.f32.xlu1 %v473_v58 }
 0x136   : > { %v635_v59 = vpop.eup %634 }
 0x137   : > { %v462_v60 = vmul.f32 %v635_v59, %v610_v43 }
 0x139   : > { %v476_v61 = vsel %vm380_vm1, %v462_v60, 0.0 }
 0x13a   : > { %477 = vadd.xlane.f32.xlu1 %v476_v61 }
 0x13b   : > { %v434_v62 = vpop.f32.mrf.mxu2 }
 0x13c   : > { %v435_v63 = vadd.f32 %v609_v40, %v434_v62 }
 0x13e   : > { %636 = vtanh.f32 %v435_v63 }
 0x143   : > { %v437_v0 = vpop.f32.mrf.mxu2 }
 0x144   : > { %v637_v1 = vpop.eup %636  ;;  %v438_v2 = vadd.f32 %v609_v40, %v437_v0 }
 0x145   : > { %v463_v3 = vmul.f32 %v637_v1, %v610_v43 }
 0x146   : > { %638 = vtanh.f32 %v438_v2 }
 0x147   : > { %v479_v4 = vsel %vm380_vm1, %v463_v3, 0.0 }
 0x148   : > { %480 = vadd.xlane.f32.xlu2 %v479_v4 }
 0x14b   : > { %v440_v5 = vpop.f32.mrf.mxu2 }
 0x14c   : > { %v639_v6 = vpop.eup %638  ;;  %v441_v7 = vadd.f32 %v609_v40, %v440_v5 }
 0x14d   : > { %v464_v8 = vmul.f32 %v639_v6, %v610_v43 }
 0x14e   : > { %640 = vtanh.f32 %v441_v7 }
 0x14f   : > { %v482_v9 = vsel %vm380_vm1, %v464_v8, 0.0 }
 0x150   : > { %483 = vadd.xlane.f32.xlu2 %v482_v9 }
 0x153   : > { %v443_v10 = vpop.f32.mrf.mxu2 }
 0x154   : > { %v641_v11 = vpop.eup %640  ;;  %v444_v12 = vadd.f32 %v609_v40, %v443_v10 }
 0x155   : > { %v465_v13 = vmul.f32 %v641_v11, %v610_v43 }
 0x156   : > { %642 = vtanh.f32 %v444_v12 }
 0x157   : > { %v485_v14 = vsel %vm380_vm1, %v465_v13, 0.0 }
 0x158   : > { %486 = vadd.xlane.f32.xlu0 %v485_v14 }
 0x15c   : > { %v643_v15 = vpop.eup %642 }
 0x15d   : > { %v466_v16 = vmul.f32 %v643_v15, %v610_v43 }
 0x15f   : > { %v488_v17 = vsel %vm380_vm1, %v466_v16, 0.0 }
 0x160   : > { %489 = vadd.xlane.f32.xlu1 %v488_v17 }
 0x195   : > { %v469_v19 = vpop.xlane.xlu0 %468 }
 0x196   : > { %v494_v20 = vadd.f32 %v611_v18, %v469_v19 }
 0x198   : > { %503 = vst.msk [vmem:[%s282_s6] sm:$0xff] %vm502_vm2, %v494_v20 }
 0x19d   : > { %v472_v21 = vpop.xlane.xlu0 %471 }
 0x19e   : > { %v495_v22 = vadd.f32 %v611_v18, %v472_v21 }
 0x1a0   : > { %504 = vst.msk [vmem:[%s282_s6 + $0x8] sm:$0xff] %vm502_vm2, %v495_v22 }
 0x1a5   : > { %v475_v23 = vpop.xlane.xlu1 %474 }
 0x1a6   : > { %v496_v24 = vadd.f32 %v611_v18, %v475_v23 }
 0x1a8   : > { %505 = vst.msk [vmem:[%s282_s6 + $0x10] sm:$0xff] %vm502_vm2, %v496_v24 }
 0x1ad   : > { %v478_v25 = vpop.xlane.xlu1 %477 }
 0x1ae   : > { %v497_v26 = vadd.f32 %v611_v18, %v478_v25 }
 0x1b0   : > { %506 = vst.msk [vmem:[%s282_s6 + $0x18] sm:$0xff] %vm502_vm2, %v497_v26 }
 0x1bb   : > { %v481_v27 = vpop.xlane.xlu2 %480 }
 0x1bc   : > { %v498_v28 = vadd.f32 %v611_v18, %v481_v27 }
 0x1be   : > { %507 = vst.msk [vmem:[%s282_s6 + $0x20] sm:$0xff] %vm502_vm2, %v498_v28 }
 0x1c3   : > { %v484_v29 = vpop.xlane.xlu2 %483 }
 0x1c4   : > { %v499_v30 = vadd.f32 %v611_v18, %v484_v29 }
 0x1c6   : > { %508 = vst.msk [vmem:[%s282_s6 + $0x28] sm:$0xff] %vm502_vm2, %v499_v30 }
 0x1cb   : > { %v487_v31 = vpop.xlane.xlu0 %486 }
 0x1cc   : > { %v500_v32 = vadd.f32 %v611_v18, %v487_v31 }
 0x1ce   : > { %509 = vst.msk [vmem:[%s282_s6 + $0x30] sm:$0xff] %vm502_vm2, %v500_v32 }
 0x1d3   : > { %v490_v33 = vpop.xlane.xlu1 %489 }
 0x1d4   : > { %v501_v34 = vadd.f32 %v611_v18, %v490_v33 }
 0x1d6   : > { %510 = vst.msk [vmem:[%s282_s6 + $0x38] sm:$0xff] %vm502_vm2, %v501_v34 }
 0x1d7 PF: > { %s19_s26 = sadd.s32 1, %s650_s26  }
 0x1d8   : > { %p16_p4 = scmp.ge.s32.totalorder %s19_s26, 6  }
 0x1da   :  { %18 = sbr.rel (!%p16_p4) target bundleno = 3 (0x3), region = 78 }

</bundles_post_ra>
